<compile_context>
chip_gen: v7x
topology: tpu7x:2x2x1
jax: 0.10.0
libtpu: 0.0.40
codegen_flags: <defaults>
</compile_context>

<pallas_src>
import functools

import jax
import jax.numpy as jnp
from jax.experimental import pallas as pl
from jax.experimental.pallas import tpu as pltpu

_HIGHEST = jax.lax.Precision.HIGHEST
_ONEHOT_MAX_NODES = 256          # one-hot MXU gather only below this padded V


def _round_up(a, m):
    return (a + m - 1) // m * m


def _row_align(*dtypes):
    """Sublane alignment for second-minor dims: 8 (f32), 16 (bf16), 32 (int8)."""
    align = 8
    for dt in dtypes:
        align = max(align, 32 // jnp.dtype(dt).itemsize)
    return align


def _vmem_budget_bytes():
    """Per-generation VMEM budget (v5e/v6e: 128 MiB physical, v7x: 64 MiB)."""
    try:
        cap = int(pltpu.get_tpu_info().vmem_capacity_bytes)
    except Exception:
        cap = 64 << 20                       # conservative: v7x per-core VMEM
    # ~3/4 of physical, capped — 48 MiB on v7x, 96 MiB on v5e/v6e.
    return max(32 << 20, min(cap * 3 // 4, 100 << 20))


def _edge_tile_rows(n_edges, hidden, in_dtype, out_dtype, resident_bytes,
                    vmem_budget):
    """Rows per streamed edge tile."""
    align = _row_align(in_dtype, out_dtype)
    in_b = jnp.dtype(in_dtype).itemsize
    out_b = jnp.dtype(out_dtype).itemsize
    per_row = hidden * (in_b + out_b) + 2 * 4        # e tile + out tile + 2 ids
    # ~2 MiB streamed per step amortizes the ~0.35us per-grid-step overhead,
    # but never exceed the double-buffered streaming budget.
    avail = max(vmem_budget - resident_bytes - (4 << 20), 1 << 20)
    rows = min((2 << 20) // per_row, avail // (2 * per_row), 8192)
    rows = max(align, rows // align * align)
    # Keep at least two grid steps (when possible) so v7x megacore splits work.
    if n_edges > align:
        rows = min(rows, _round_up(-(-n_edges // 2), align))
    return max(align, rows)


def _node_linear_kernel(x_ref, wvT_ref, bv_ref, o_ref, *, precision):
    # Vx = x @ Wv^T + bv   (f32 output, streamed over node-row tiles)
    x = x_ref[...].astype(jnp.float32)
    w = wvT_ref[...].astype(jnp.float32)
    b = bv_ref[...].astype(jnp.float32)
    y = jnp.dot(x, w, precision=precision, preferred_element_type=jnp.float32)
    o_ref[...] = (y + b).astype(o_ref.dtype)


def _edge_kernel(src_ref, dst_ref, e_ref, wuT_ref, bu_ref, vx_ref, o_ref, *,
                 use_onehot, precision):
    # One streamed tile of edges: Ue + Vx[src] + Vx[dst].
    ev = e_ref[...].astype(jnp.float32)          # (TE, H)  (tail rows of a
    wuT = wuT_ref[...].astype(jnp.float32)       # (H, H)    ragged last tile
    bu = bu_ref[...].astype(jnp.float32)         # (1, H)    are garbage but the
    vx = vx_ref[...]                             # (Vp, H)   output store masks
                                                 #           them)
    # Us(e) on the MXU.
    ue = jnp.dot(ev, wuT, precision=precision,
                 preferred_element_type=jnp.float32) + bu

    if use_onehot:
        # Small-V fast path: gather-add as a transposed one-hot MXU matmul.
        # ids are lane-dense, so the one-hot is built as (Vp, TE) and contracted
        # over dim 0 (no id relayout).  HIGHEST keeps the f32 Vx exact.
        te, vp = ev.shape[0], vx.shape[0]
        sids = src_ref[0]                        # (1, TE) int32
        dids = dst_ref[0]                        # (1, TE)
        node_col = jax.lax.broadcasted_iota(jnp.int32, (vp, te), 0)
        onehot_t = ((sids == node_col).astype(jnp.float32)
                    + (dids == node_col).astype(jnp.float32))      # (Vp, TE)
        agg = jax.lax.dot_general(
            onehot_t, vx, (((0,), (0,)), ((), ())),
            precision=_HIGHEST, preferred_element_type=jnp.float32)  # (TE, H)
    else:
        # Large-V path: direct VMEM row gather, O(TE*H) instead of O(TE*Vp*H).
        # Padded tail ids are 0, so every index is valid.
        # TODO(synk): for V where Vx exceeds the VMEM budget, leave Vx in HBM
        # (memory_space=pl.ANY) and do a double-buffered DMA row-gather.
        sids = src_ref[0, 0, :]
        dids = dst_ref[0, 0, :]
        agg = jnp.take(vx, sids, axis=0) + jnp.take(vx, dids, axis=0)

    # TODO(synk): for small H (e.g. 32) this store is a masked 32/128-lane vst;
    # pad H to a multiple of 128 at the model level for a lane-dense store.
    o_ref[...] = (ue + agg).astype(o_ref.dtype)


def _resident_spec(block_shape, buffered):
    index_map = lambda i: (0,) * len(block_shape)
    if buffered and hasattr(pl, "Buffered"):
        try:
            # Constant-index inputs never re-DMA; single-buffering them halves
            # their VMEM footprint (matters most on v7x's 64 MiB VMEM).
            return pl.BlockSpec(block_shape, index_map,
                                pipeline_mode=pl.Buffered(1))
        except TypeError:
            pass
    return pl.BlockSpec(block_shape, index_map)


def _edge_call(src3, dst3, e, wuT, bu_row, vx, te, vmem_budget, use_onehot,
               precision, resident_buffered):
    E, H = e.shape
    Vp = vx.shape[0]
    kernel = functools.partial(_edge_kernel, use_onehot=use_onehot,
                               precision=precision)
    return pl.pallas_call(
        kernel,
        out_shape=jax.ShapeDtypeStruct((E, H), e.dtype),
        grid_spec=pltpu.PrefetchScalarGridSpec(
            num_scalar_prefetch=0,
            grid=(pl.cdiv(E, te),),                       # ragged last block
            in_specs=[
                pl.BlockSpec((1, 1, te), lambda i: (i, 0, 0)),  # src ids
                pl.BlockSpec((1, 1, te), lambda i: (i, 0, 0)),  # dst ids
                pl.BlockSpec((te, H), lambda i: (i, 0)),        # e (streamed)
                _resident_spec((H, H), resident_buffered),      # Wu^T
                _resident_spec((1, H), resident_buffered),      # bu
                _resident_spec((Vp, H), resident_buffered),     # Vx
            ],
            out_specs=pl.BlockSpec((te, H), lambda i: (i, 0)),
        ),
        compiler_params=pltpu.CompilerParams(
            dimension_semantics=("parallel",),            # v7x megacore split
            vmem_limit_bytes=vmem_budget,
        ),
    )(src3, dst3, e, wuT, bu_row, vx)


def edge_features(x, e, edge_index, wu, bu, wv, bv, *, precision=_HIGHEST):
    """e_new = (e @ wu.T + bu) + Vx[src] + Vx[dst],  Vx = x @ wv.T + bv."""
    V, H = x.shape
    E, He = e.shape
    assert He == H
    src = edge_index[0].astype(jnp.int32)
    dst = edge_index[1].astype(jnp.int32)
    vmem_budget = _vmem_budget_bytes()

    # ---------------- node-side linear: Vx = x @ Wv^T + bv (f32) -------------
    Vp = _round_up(V, 8)
    # Padded rows of Vx come out equal to bv (zero x rows + bias); harmless —
    # no valid edge ever indexes a node >= V and padded ids are 0.
    x_p = jnp.pad(x, ((0, Vp - V), (0, 0)))
    tv = min(Vp, 4096)
    vx = pl.pallas_call(
        functools.partial(_node_linear_kernel, precision=precision),
        out_shape=jax.ShapeDtypeStruct((Vp, H), jnp.float32),
        grid_spec=pltpu.PrefetchScalarGridSpec(
            num_scalar_prefetch=0,
            grid=(pl.cdiv(Vp, tv),),
            in_specs=[
                pl.BlockSpec((tv, H), lambda i: (i, 0)),
                pl.BlockSpec((H, H), lambda i: (0, 0)),
                pl.BlockSpec((1, H), lambda i: (0, 0)),
            ],
            out_specs=pl.BlockSpec((tv, H), lambda i: (i, 0)),
        ),
        compiler_params=pltpu.CompilerParams(
            dimension_semantics=("parallel",)),
    )(x_p, wv.T, bv.reshape(1, H))
    # TODO(synk): fold this into the edge kernel (persistent VMEM scratch +
    # SMEM "done" flag) to save one launch and the Vx HBM round trip.

    # ---------------- fused edge kernel, streamed over ragged edge tiles -----
    resident_bytes = 2 * (Vp * H + H * H + H) * 4        # worst case (2 bufs)
    te = _edge_tile_rows(E, H, e.dtype, e.dtype, resident_bytes, vmem_budget)
    n_tiles = pl.cdiv(E, te)
    # Only the tiny id vectors are padded (to valid index 0); `e` and the output
    # are NOT padded — the tail of the ragged last block never leaves the kernel.
    pad = n_tiles * te - E
    src3 = jnp.pad(src, (0, pad)).reshape(n_tiles, 1, te)
    dst3 = jnp.pad(dst, (0, pad)).reshape(n_tiles, 1, te)
    use_onehot = Vp <= _ONEHOT_MAX_NODES

    args = (src3, dst3, e, wu.T, bu.reshape(1, H), vx, te, vmem_budget,
            use_onehot, precision)
    try:
        return _edge_call(*args, resident_buffered=True)
    except Exception:
        # pl.Buffered(1) not supported by this jax build -> default buffering.
        return _edge_call(*args, resident_buffered=False)


def _reference(x, e, edge_index, wu, bu, wv, bv):
    ue = jnp.dot(e, wu.T, precision=_HIGHEST) + bu
    vx = jnp.dot(x, wv.T, precision=_HIGHEST) + bv
    src, dst = edge_index
    return (ue + vx[src] + vx[dst]).astype(e.dtype)


if __name__ == "__main__":
    key = jax.random.PRNGKey(0)
    V, H, E = 12, 32, 100   # num_nodes, hidden_dim, num_edges (E not tile-aligned)

    keys = jax.random.split(key, 8)
    x = jax.random.normal(keys[0], (V, H), dtype=jnp.float32)
    e = jax.random.normal(keys[1], (E, H), dtype=jnp.float32)
    src = jax.random.randint(keys[2], (E,), 0, V, dtype=jnp.int32)
    dst = jax.random.randint(keys[3], (E,), 0, V, dtype=jnp.int32)
    edge_index = jnp.stack([src, dst], axis=0)

    bound = 1.0 / (H ** 0.5)  # PyTorch nn.Linear default init scale
    wu = jax.random.uniform(keys[4], (H, H), jnp.float32, -bound, bound)
    bu = jax.random.uniform(keys[5], (H,), jnp.float32, -bound, bound)
    wv = jax.random.uniform(keys[6], (H, H), jnp.float32, -bound, bound)
    bv = jax.random.uniform(keys[7], (H,), jnp.float32, -bound, bound)

    out = edge_features(x, e, edge_index, wu, bu, wv, bv)
    out = jax.block_until_ready(out)

    ref = _reference(x, e, edge_index, wu, bu, wv, bv)
    assert out.shape == e.shape and out.dtype == e.dtype
    assert jnp.allclose(out, ref, atol=1e-4, rtol=1e-4), float(
        jnp.max(jnp.abs(out - ref)))

    print("KERNEL_OK")
</pallas_src>

<mosaic_0001>
module attributes {stable_mosaic.version = 11 : i64} {
  func.func @_node_linear_kernel(%arg0: i32, %arg1: memref<16x32xf32, #tpu.memory_space<vmem>>, %arg2: memref<32x32xf32, #tpu.memory_space<vmem>>, %arg3: memref<1x32xf32, #tpu.memory_space<vmem>>, %arg4: memref<16x32xf32, #tpu.memory_space<vmem>>) attributes {dimension_semantics = [#tpu.dimension_semantics<parallel>], iteration_bounds = array<i64: 1>, scalar_prefetch = 0 : i64, scratch_operands = 0 : i64, tpu.core_type = #tpu.core_type<tc>, window_params = [{transform_indices = @transform_0, window_bounds = array<i64: 16, 32>}, {pipeline_mode = #tpu.pipeline_mode<synchronous>, transform_indices = @transform_1, window_bounds = array<i64: 32, 32>}, {pipeline_mode = #tpu.pipeline_mode<synchronous>, transform_indices = @transform_2, window_bounds = array<i64: 1, 32>}, {transform_indices = @transform_3, window_bounds = array<i64: 16, 32>}]} {
    %c0 = arith.constant 0 : index
    %c0_0 = arith.constant 0 : index
    %0 = vector.load %arg1[%c0, %c0_0] : memref<16x32xf32, #tpu.memory_space<vmem>>, vector<16x32xf32>
    %c0_1 = arith.constant 0 : index
    %c0_2 = arith.constant 0 : index
    %1 = vector.load %arg2[%c0_1, %c0_2] : memref<32x32xf32, #tpu.memory_space<vmem>>, vector<32x32xf32>
    %c0_3 = arith.constant 0 : index
    %c0_4 = arith.constant 0 : index
    %2 = vector.load %arg3[%c0_3, %c0_4] : memref<1x32xf32, #tpu.memory_space<vmem>>, vector<1x32xf32>
    %cst = arith.constant dense<0.000000e+00> : vector<16x32xf32>
    %3 = tpu.matmul %0, %1, %cst {dimension_numbers = #tpu.dot_dimension_numbers<[1], [0], [0], [1], [0, 0, 1, 1], [], []>, precision = #tpu.contract_precision<fp32>} : vector<16x32xf32>, vector<32x32xf32>, vector<16x32xf32> -> vector<16x32xf32>
    %4 = vector.broadcast %2 : vector<1x32xf32> to vector<16x32xf32>
    %5 = arith.addf %3, %4 : vector<16x32xf32>
    %c0_5 = arith.constant 0 : index
    %c0_6 = arith.constant 0 : index
    %6 = vector.load %arg4[%c0_5, %c0_6] : memref<16x32xf32, #tpu.memory_space<vmem>>, vector<16x32xf32>
    tpu.vector_store %arg4[%c0_5, %c0_6], %5 {strides = array<i32>} : memref<16x32xf32, #tpu.memory_space<vmem>>, vector<16x32xf32>,
    return
  }
  func.func @transform_0(%arg0: i32) -> (i32, i32) {
    %c0_i32 = arith.constant 0 : i32
    %c0_i32_0 = arith.constant 0 : i32
    return %arg0, %c0_i32 : i32, i32
  }
  func.func @transform_1(%arg0: i32) -> (i32, i32) {
    %c0_i32 = arith.constant 0 : i32
    %c0_i32_0 = arith.constant 0 : i32
    %c0_i32_1 = arith.constant 0 : i32
    return %c0_i32, %c0_i32_0 : i32, i32
  }
  func.func @transform_2(%arg0: i32) -> (i32, i32) {
    %c0_i32 = arith.constant 0 : i32
    %c0_i32_0 = arith.constant 0 : i32
    %c0_i32_1 = arith.constant 0 : i32
    return %c0_i32, %c0_i32_0 : i32, i32
  }
  func.func @transform_3(%arg0: i32) -> (i32, i32) {
    %c0_i32 = arith.constant 0 : i32
    %c0_i32_0 = arith.constant 0 : i32
    return %arg0, %c0_i32 : i32, i32
  }
}

</mosaic_0001>

<bundles_post_ra>
// kernel: tpu_custom_call.1
= control target key start
LH: loop header
LB: loop body
LE: loop exit
PB: predicated region body
PF: predicated region fallthrough
CT: control target
= control target key end

     0   :  { %8 = vsyncpa [#allocation3], 0  ;;  %s940_s0 = inlined_call_operand.hbm [shape: f32[16,32], index: 0, kind: input, shape index: {}]   ;;  %s941_s1 = inlined_call_operand.hbm [shape: f32[32,32], index: 1, kind: input, shape index: {}]   ;;  %s942_s2 = inlined_call_operand.vmem [shape: f32[1,32], index: 2, kind: input, shape index: {}]   ;;  %s943_s3 = inlined_call_operand.hbm [shape: f32[16,32], index: 3, kind: output, shape index: {}]  }
   0x1   :  { %9 = vsyncpa [#allocation6], 0 }
   0x2   :  { %10 = vsyncpa [#allocation4], 0  ;;  %s851_s12 = smov [#allocation2]   ;;  %s779_s16 = scalar_lea.hbm %s940_s0, 256 }
   0x3   :  { %s16_s13 = sshll.u32 %s851_s12, 4  ;;  %p780_p0 = scmp.ne.s32.totalorder %s940_s0, %s779_s16  ;;  %s17_s13 = int_to_ptr.vmem [resolvable:$true] %s16_s13 }
   0x4   :  { %p783_p1 = scmp.lt.u32.totalorder %s779_s16, %s940_s0 }
   0x6   :  { %p785_p2 = pnand %p783_p1, %p780_p0 }
   0x8   :  { %788 = shalt.err (!%p785_p2)
}
   0x9   :  { %s789_s21 = scalar_lea.vmem %s17_s13, 256  ;;  %p794_p4 = scmp.lt.s32.totalorder %s17_s13, %s17_s13 }
   0xa   :  { %p790_p3 = scmp.ne.s32.totalorder %s17_s13, %s789_s21  ;;  %p795_p5 = scmp.lt.s32.totalorder %s789_s21, %s789_s21 }
   0xc   :  { %p796_p6 = por %p795_p5, %p794_p4 }
   0xe   :  { %p797_p7 = pnand %p796_p6, %p790_p3 }
  0x10   :  { %800 = shalt.err (!%p797_p7)
}
  0x11   :  { %s852_s22 = smov 128   ;;  %s853_s23 = smov 8  }
  0x12   :  { %22 = dma.hbm_to_vmem [thread:$0]  %s940_s0, 256, %s17_s13, [#allocation3], %s852_s22, %s852_s22, %s853_s23  }
  0x13   :  { %s854_s26 = smov [#allocation5]   ;;  %s801_s30 = scalar_lea.hbm %s941_s1, 512 }
  0x14   :  { %s28_s27 = sshll.u32 %s854_s26, 4  ;;  %p802_p8 = scmp.ne.s32.totalorder %s941_s1, %s801_s30  ;;  %s29_s27 = int_to_ptr.vmem [resolvable:$true] %s28_s27 }
  0x15   :  { %p805_p9 = scmp.lt.u32.totalorder %s801_s30, %s941_s1 }
  0x17   :  { %p807_p10 = pnand %p805_p9, %p802_p8 }
  0x19   :  { %810 = shalt.err (!%p807_p10)
}
  0x1a   :  { %s811_s8 = scalar_lea.vmem %s29_s27, 512  ;;  %p816_p12 = scmp.lt.s32.totalorder %s29_s27, %s29_s27 }
  0x1b   :  { %p812_p11 = scmp.ne.s32.totalorder %s29_s27, %s811_s8  ;;  %p817_p13 = scmp.lt.s32.totalorder %s811_s8, %s811_s8 }
  0x1d   :  { %p818_p0 = por %p817_p13, %p816_p12 }
  0x1f   :  { %p819_p1 = pnand %p818_p0, %p812_p11 }
  0x21   :  { %822 = shalt.err (!%p819_p1)
}
  0x22   :  { %34 = dma.hbm_to_vmem [thread:$0]  %s941_s1, 512, %s29_s27, [#allocation6], %s852_s22, %s852_s22, %s853_s23  }
  0x23   :  { %845 = dma.done.wait [#allocation3], 256  }
  0x24   :  { %846 = vsyncadd [#allocation3], 4294967040 }
  0x25   :  { %847 = dma.done.wait [#allocation6], 512  }
  0x26   :  { %848 = vsyncadd [#allocation6], 4294966784  ;;  %vm56_vm0 = vcmask 261120   ;;  %v45_v0 = vld [vmem:[#allocation5] sm:$0xff]  ;;  %v46_v1 = vld [vmem:[#allocation5 + $0x8] sm:$0xff]  ;;  %s855_s11 = smov [#allocation7]  }
  0x27   :  { %v47_v2 = vld [vmem:[#allocation5 + $0x10] sm:$0xff]  ;;  %v64_v3 = vand.u32 4294901760, %v45_v0  ;;  %v67_v4 = vand.u32 4294901760, %v46_v1  ;;  %v48_v5 = vld [vmem:[#allocation5 + $0x18] sm:$0xff]  ;;  %s598_s12 = sshll.u32 %s855_s11, 4  ;;  %s599_s12 = int_to_ptr.vmem [resolvable:$true] %s598_s12 }
  0x28   :  { %v70_v6 = vand.u32 4294901760, %v47_v2  ;;  %v43_v7 = vld [vmem:[#allocation2] sm:$0xff]  ;;  %v44_v8 = vld [vmem:[#allocation2 + $0x8] sm:$0xff]  ;;  %v73_v9 = vand.u32 4294901760, %v48_v5  ;;  %s823_s13 = scalar_lea.vmem %s599_s12, 256  ;;  %p828_p3 = scmp.lt.s32.totalorder %s599_s12, %s599_s12 }
  0x29   :  { %v58_v10 = vsel %vm56_vm0, %v43_v7, 0  ;;  %v61_v11 = vsel %vm56_vm0, %v44_v8, 0  ;;  %v714_v12 = vpack.c.bf16 %v67_v4, %v64_v3  ;;  %v154_v15 = vsub.f32 %v45_v0, %v64_v3  ;;  %v611_v46 = vld [vmem:[%s942_s2] ss:$0 sm:$0xff]  ;;  %p824_p2 = scmp.ne.s32.totalorder %s599_s12, %s823_s13  ;;  %p829_p4 = scmp.lt.s32.totalorder %s823_s13, %s823_s13 }
  0x2a   :  { %v908_v13 = vand.u32 4294901760, %v58_v10  ;;  %v910_v14 = vand.u32 4294901760, %v61_v11  ;;  %v718_v16 = vpack.c.bf16 %v73_v9, %v70_v6  ;;  %v161_v17 = vsub.f32 %v46_v1, %v67_v4 }
  0x2b   :  { %v168_v18 = vsub.f32 %v47_v2, %v70_v6  ;;  %v175_v19 = vsub.f32 %v48_v5, %v73_v9  ;;  %715 = vmatprep.subr.bf16.mxu1 %v714_v12  ;;  %739 = vmatprep.subr.bf16.mxu0 %v714_v12  ;;  %v155_v22 = vand.u32 4294901760, %v154_v15  ;;  %p830_p5 = por %p829_p4, %p828_p3 }
  0x2c   :  { %v133_v20 = vsub.f32 %v58_v10, %v908_v13  ;;  %v143_v21 = vsub.f32 %v61_v11, %v910_v14  ;;  %717 = vmatpush3.bf16.msra.mxu1 %v714_v12  ;;  %741 = vmatpush3.bf16.msra.mxu0 %v714_v12  ;;  %v162_v23 = vand.u32 4294901760, %v161_v17  ;;  %v730_v44 = vpack.c.bf16 %v161_v17, %v154_v15 }
  0x2d   :  { %v169_v24 = vand.u32 4294901760, %v168_v18  ;;  %v176_v25 = vand.u32 4294901760, %v175_v19  ;;  %719 = vmatprep.subr.bf16.mxu1 %v718_v16  ;;  %743 = vmatprep.subr.bf16.mxu0 %v718_v16  ;;  %v156_v28 = vsub.f32 %v154_v15, %v155_v22  ;;  %v734_v45 = vpack.c.bf16 %v175_v19, %v168_v18  ;;  %p831_p6 = pnand %p830_p5, %p824_p2 }
  0x2e   :  { %v134_v26 = vand.u32 4294901760, %v133_v20  ;;  %v144_v27 = vand.u32 4294901760, %v143_v21  ;;  %v163_v29 = vsub.f32 %v161_v17, %v162_v23  ;;  %v746_v30 = vpack.c.bf16 %v162_v23, %v155_v22 }
  0x2f   :  { %v170_v31 = vsub.f32 %v168_v18, %v169_v24  ;;  %v177_v32 = vsub.f32 %v175_v19, %v176_v25  ;;  %v157_v35 = vand.u32 4294901760, %v156_v28  ;;  %v750_v43 = vpack.c.bf16 %v176_v25, %v169_v24 }
  0x30   :  { %v135_v33 = vsub.f32 %v133_v20, %v134_v26  ;;  %689 = vmatprep.mubr.f32.mxu0 %v134_v26  ;;  %v145_v34 = vsub.f32 %v143_v21, %v144_v27  ;;  %721 = vmatpush3.bf16.msra.mxu1 %v718_v16  ;;  %v164_v36 = vand.u32 4294901760, %v163_v29 }
  0x31   :  { %745 = vmatpush3.bf16.msra.mxu0 %v718_v16  ;;  %v171_v37 = vand.u32 4294901760, %v170_v31  ;;  %v178_v38 = vand.u32 4294901760, %v177_v32 }
  0x32   :  { %v136_v39 = vand.u32 4294901760, %v135_v33  ;;  %v146_v40 = vand.u32 4294901760, %v145_v34  ;;  %747 = vmatprep.subr.bf16.mxu0 %v746_v30  ;;  %v722_v41 = vpack.c.bf16 %v164_v36, %v157_v35 }
  0x33   :  { %v726_v42 = vpack.c.bf16 %v178_v38, %v171_v37 }
  0x34   :  { %656 = vmatprep.mubr.f32.mxu1 %v136_v39  ;;  %690 = vmatmul.mubr.f32.vlgmr.msra.gmra.mrb[0].mxu0 %v144_v27 }
  0x35   :  { %657 = vmatmul.mubr.f32.vlgmr.msra.gmra.mrb[0].mxu1 %v146_v40  ;;  %723 = vmatprep.subr.bf16.mxu1 %v722_v41 }
  0x36   :  { %725 = vmatpush3.bf16.msra.mxu1 %v722_v41  ;;  %749 = vmatpush3.bf16.msra.mxu0 %v746_v30 }
  0x37   :  { %727 = vmatprep.subr.bf16.mxu1 %v726_v42  ;;  %751 = vmatprep.subr.bf16.mxu0 %v750_v43 }
  0x38   :  { %667 = vmatprep.mubr.f32.mxu1 %v908_v13  ;;  %700 = vmatprep.mubr.f32.mxu0 %v908_v13 }
  0x3a   :  { %729 = vmatpush3.bf16.msra.mxu1 %v726_v42  ;;  %753 = vmatpush3.bf16.msra.mxu0 %v750_v43 }
  0x3b   :  { %731 = vmatprep.subr.bf16.mxu1 %v730_v44  ;;  %755 = vmatprep.subr.bf16.mxu0 %v714_v12 }
  0x3d   :  { %668 = vmatmul.mubr.f32.vlgmr.msra.gmra.mrb[0].mxu1 %v910_v14  ;;  %701 = vmatmul.mubr.f32.vlgmr.msra.gmra.mrb[0].mxu0 %v910_v14 }
  0x3e   :  { %733 = vmatpush3.bf16.msra.mxu1 %v730_v44  ;;  %757 = vmatpush3.bf16.msra.mxu0 %v714_v12 }
  0x3f   :  { %735 = vmatprep.subr.bf16.mxu1 %v734_v45  ;;  %759 = vmatprep.subr.bf16.mxu0 %v718_v16 }
  0x40   :  { %678 = vmatprep.mubr.f32.mxu1 %v133_v20  ;;  %711 = vmatprep.mubr.f32.mxu0 %v908_v13 }
  0x42   :  { %737 = vmatpush3.bf16.msra.mxu1 %v734_v45  ;;  %761 = vmatpush3.bf16.msra.mxu0 %v718_v16 }
  0x45   :  { %679 = vmatmul.mubr.f32.vlgmr.msra.gmra.mrb[0].mxu1 %v143_v21  ;;  %712 = vmatmul.mubr.f32.vlgmr.msra.gmra.mrb[0].mxu0 %v910_v14 }
 0x118   :  { %v680_v47 = vpop.f32.mrb[0].mxu1  ;;  %v713_v48 = vpop.f32.mrb[0].mxu0 }
 0x119   :  { %v762_v49 = vadd.f32 %v680_v47, %v611_v46  ;;  %v325_v50 = vpop.f32.mrb[1].mxu1  ;;  %v581_v51 = vpop.f32.mrb[1].mxu0 }
 0x11a   :  { %v764_v52 = vadd.f32 %v611_v46, %v325_v50 }
 0x11b   :  { %v763_v53 = vadd.f32 %v762_v49, %v713_v48 }
 0x11c   :  { %v765_v54 = vadd.f32 %v764_v52, %v581_v51 }
 0x11d   :  { %592 = vst.msk [vmem:[#allocation7 + $0x8] sm:$0xff] %vm56_vm0, %v763_v53 }
 0x11e   :  { %591 = vst.msk [vmem:[#allocation7] sm:$0xff] %vm56_vm0, %v765_v54 }
 0x11f   :  { %834 = shalt.err (!%p831_p6)
}
 0x120   :  { %s835_s15 = scalar_lea.hbm %s943_s3, 256 }
 0x121   :  { %p836_p7 = scmp.ne.s32.totalorder %s943_s3, %s835_s15  ;;  %p839_p8 = scmp.lt.u32.totalorder %s835_s15, %s943_s3 }
 0x123   :  { %p841_p9 = pnand %p839_p8, %p836_p7 }
 0x125   :  { %844 = shalt.err (!%p841_p9)
}
 0x126   :  { %604 = dma.vmem_to_hbm [thread:$0]  %s599_s12, 256, %s943_s3, [#allocation4], %s852_s22, %s852_s22, %s853_s23  }
 0x127   :  { %849 = dma.done.wait [#allocation4], 256  }
 0x128   :  { %850 = vsyncadd [#allocation4], 4294967040 }
 0x129   :  { %608 = vsyncpa [#allocation3], 1 }
 0x12a   :  { %609 = vsyncpa [#allocation6], 1 }
 0x12b   :  { %610 = vsyncpa [#allocation4], 1 }

</bundles_post_ra>
